<compile_context>
chip_gen: v7x
topology: tpu7x:2x2x1
jax: 0.10.0
libtpu: 0.0.40
codegen_flags: <defaults>
</compile_context>

<pallas_src>
import functools

import jax
import jax.numpy as jnp
from jax.experimental import pallas as pl
from jax.experimental.pallas import tpu as pltpu


def _cross_attn_kernel(x_ref, y_ref, wq_ref, wk_ref, wv_ref, wp_ref, bp_ref,
                       o_ref, *, scale):
    """One grid step = (one batch block, one head)."""
    h = pl.program_id(1)
    tb, nq, c = x_ref.shape
    nk = y_ref.shape[1]
    d = wq_ref.shape[-1]

    # Flatten (TB, N, C) -> (TB*N, C): tall projection matmuls for MXU fill.
    xf = x_ref[...].reshape(tb * nq, c)
    yf = y_ref[...].reshape(tb * nk, c)

    q = jnp.dot(xf, wq_ref[0], preferred_element_type=jnp.float32).reshape(tb, nq, d)
    k = jnp.dot(yf, wk_ref[0], preferred_element_type=jnp.float32).reshape(tb, nk, d)
    v = jnp.dot(yf, wv_ref[0], preferred_element_type=jnp.float32).reshape(tb, nk, d)

    # Scaled dot-product attention for this head, batched over the TB batches.
    s = jnp.einsum("bqd,bkd->bqk", q, k,
                   preferred_element_type=jnp.float32) * scale
    s = s - jnp.max(s, axis=-1, keepdims=True)
    p = jnp.exp(s)
    p = p / jnp.sum(p, axis=-1, keepdims=True)
    ctx = jnp.einsum("bqk,bkd->bqd", p, v, preferred_element_type=jnp.float32)

    # Per-head slice of the output projection, accumulated into the resident
    # output block:  out = sum_h ctx_h @ Wproj[h] + b_proj.
    partial = jnp.dot(ctx.reshape(tb * nq, d), wp_ref[0],
                      preferred_element_type=jnp.float32).reshape(tb, nq, c)

    @pl.when(h == 0)
    def _():
        o_ref[...] = jnp.zeros_like(o_ref)

    o_ref[...] += partial

    @pl.when(h == pl.num_programs(1) - 1)
    def _():
        o_ref[...] += bp_ref[...]


def cross_attention_forward(x, y, params, *, num_heads, qk_scale=None,
                            batch_block=None):
    """x: (B, Nq, C) queries, y: (B, Nk, C) keys/values -> (B, Nq, C)."""
    B, Nq, C = x.shape
    By, Nk, Cy = y.shape
    assert By == B and Cy == C
    H = num_heads
    D = C // H
    assert H * D == C, "dim must be divisible by num_heads"
    scale = float(qk_scale) if qk_scale is not None else float(D) ** -0.5

    TB = B if batch_block is None else batch_block
    assert B % TB == 0

    x = x.astype(jnp.float32)
    y = y.astype(jnp.float32)
    wq = params["wq"].astype(jnp.float32)    # (C, C)   q  = x @ wq
    wkv = params["wkv"].astype(jnp.float32)  # (C, 2C)  kv = y @ wkv
    wp = params["wp"].astype(jnp.float32)    # (C, C)   out = ctx @ wp + bp
    bp = params["bp"].astype(jnp.float32)    # (C,)

    # Per-head weight slabs with the head axis leading, so every BlockSpec
    # block covers the full last-two dims (layout-friendly tiles).
    wq_h = wq.reshape(C, H, D).transpose(1, 0, 2)          # (H, C, D)
    wk_h = wkv[:, :C].reshape(C, H, D).transpose(1, 0, 2)  # (H, C, D)
    wv_h = wkv[:, C:].reshape(C, H, D).transpose(1, 0, 2)  # (H, C, D)
    wp_h = wp.reshape(H, D, C)                             # (H, D, C)
    bp2 = bp.reshape(1, C)

    kernel = functools.partial(_cross_attn_kernel, scale=scale)

    out = pl.pallas_call(
        kernel,
        out_shape=jax.ShapeDtypeStruct((B, Nq, C), jnp.float32),
        grid_spec=pltpu.PrefetchScalarGridSpec(
            num_scalar_prefetch=0,
            grid=(B // TB, H),
            in_specs=[
                pl.BlockSpec((TB, Nq, C), lambda b, h: (b, 0, 0)),   # x
                pl.BlockSpec((TB, Nk, C), lambda b, h: (b, 0, 0)),   # y
                pl.BlockSpec((1, C, D), lambda b, h: (h, 0, 0)),     # Wq[h]
                pl.BlockSpec((1, C, D), lambda b, h: (h, 0, 0)),     # Wk[h]
                pl.BlockSpec((1, C, D), lambda b, h: (h, 0, 0)),     # Wv[h]
                pl.BlockSpec((1, D, C), lambda b, h: (h, 0, 0)),     # Wproj[h]
                pl.BlockSpec((1, C), lambda b, h: (0, 0)),           # b_proj
            ],
            out_specs=pl.BlockSpec((TB, Nq, C), lambda b, h: (b, 0, 0)),
        ),
        compiler_params=pltpu.CompilerParams(
            dimension_semantics=("parallel", "arbitrary")),
    )(x, y, wq_h, wk_h, wv_h, wp_h, bp2)
    return out


# --------------------------------------------------------------------------
# Pure-JAX reference mirroring the PyTorch forward (for correctness check).
# --------------------------------------------------------------------------
def cross_attention_ref(x, y, params, *, num_heads, qk_scale=None):
    B, Nq, C = x.shape
    _, Nk, _ = y.shape
    H, D = num_heads, C // num_heads
    scale = float(qk_scale) if qk_scale is not None else float(D) ** -0.5

    q = (x @ params["wq"]).reshape(B, Nq, H, D).transpose(0, 2, 1, 3)     # (B,H,Nq,D)
    kv = (y @ params["wkv"]).reshape(B, Nk, 2, H, D).transpose(2, 0, 3, 1, 4)
    k, v = kv[0], kv[1]                                                   # (B,H,Nk,D)
    attn = jnp.einsum("bhqd,bhkd->bhqk", q, k) * scale
    attn = jax.nn.softmax(attn, axis=-1)
    out = jnp.einsum("bhqk,bhkd->bhqd", attn, v)
    out = out.transpose(0, 2, 1, 3).reshape(B, Nq, C)
    return out @ params["wp"] + params["bp"]


def init_params(key, dim):
    ks = jax.random.split(key, 4)

    def w(k, shape, fan_in):
        return jax.random.normal(k, shape, jnp.float32) / jnp.sqrt(fan_in)

    return {
        # torch Linear weight is (out, in); these are the (in, out) matmul
        # weights, i.e. the transpose of the torch parameters.
        "wq": w(ks[0], (dim, dim), dim),
        "wkv": w(ks[1], (dim, 2 * dim), dim),
        "wp": w(ks[2], (dim, dim), dim),
        "bp": 0.02 * jax.random.normal(ks[3], (dim,), jnp.float32),
    }


if __name__ == "__main__":
    # TODO(synk): qkv_bias=True is not implemented (module default is False);
    # attn_drop / proj_drop default to 0.0 so dropout is an exact identity.
    key = jax.random.PRNGKey(0)
    kx, ky, kp = jax.random.split(key, 3)

    B, NQ, NK, DIM, HEADS = 2, 8, 16, 32, 4   # head_dim = 8
    x = jax.random.normal(kx, (B, NQ, DIM), jnp.float32)
    y = jax.random.normal(ky, (B, NK, DIM), jnp.float32)
    params = init_params(kp, DIM)

    out = cross_attention_forward(x, y, params, num_heads=HEADS)
    out = jax.block_until_ready(out)

    ref = cross_attention_ref(x, y, params, num_heads=HEADS)
    assert out.shape == (B, NQ, DIM), out.shape
    max_err = float(jnp.max(jnp.abs(out - ref)))
    assert jnp.allclose(out, ref, atol=1e-4, rtol=1e-4), max_err
    print("KERNEL_OK")
</pallas_src>

<mosaic_0001>
module attributes {stable_mosaic.version = 11 : i64} {
  func.func @_cross_attn_kernel(%arg0: i32, %arg1: i32, %arg2: memref<2x8x32xf32, #tpu.memory_space<vmem>>, %arg3: memref<2x16x32xf32, #tpu.memory_space<vmem>>, %arg4: memref<1x32x8xf32, #tpu.memory_space<vmem>>, %arg5: memref<1x32x8xf32, #tpu.memory_space<vmem>>, %arg6: memref<1x32x8xf32, #tpu.memory_space<vmem>>, %arg7: memref<1x8x32xf32, #tpu.memory_space<vmem>>, %arg8: memref<1x32xf32, #tpu.memory_space<vmem>>, %arg9: memref<2x8x32xf32, #tpu.memory_space<vmem>>) attributes {dimension_semantics = [#tpu.dimension_semantics<parallel>, #tpu.dimension_semantics<arbitrary>], iteration_bounds = array<i64: 1, 4>, scalar_prefetch = 0 : i64, scratch_operands = 0 : i64, tpu.core_type = #tpu.core_type<tc>, window_params = [{transform_indices = @transform_0, window_bounds = array<i64: 2, 8, 32>}, {transform_indices = @transform_1, window_bounds = array<i64: 2, 16, 32>}, {transform_indices = @transform_2, window_bounds = array<i64: 1, 32, 8>}, {transform_indices = @transform_3, window_bounds = array<i64: 1, 32, 8>}, {transform_indices = @transform_4, window_bounds = array<i64: 1, 32, 8>}, {transform_indices = @transform_5, window_bounds = array<i64: 1, 8, 32>}, {pipeline_mode = #tpu.pipeline_mode<synchronous>, transform_indices = @transform_6, window_bounds = array<i64: 1, 32>}, {transform_indices = @transform_7, window_bounds = array<i64: 2, 8, 32>}]} {
    %c0 = arith.constant 0 : index
    %c0_0 = arith.constant 0 : index
    %c0_1 = arith.constant 0 : index
    %0 = vector.load %arg2[%c0, %c0_0, %c0_1] : memref<2x8x32xf32, #tpu.memory_space<vmem>>, vector<2x8x32xf32>
    %1 = vector.shape_cast %0 : vector<2x8x32xf32> to vector<16x32xf32>
    %c0_2 = arith.constant 0 : index
    %c0_3 = arith.constant 0 : index
    %c0_4 = arith.constant 0 : index
    %2 = vector.load %arg3[%c0_2, %c0_3, %c0_4] : memref<2x16x32xf32, #tpu.memory_space<vmem>>, vector<2x16x32xf32>
    %3 = vector.shape_cast %2 : vector<2x16x32xf32> to vector<32x32xf32>
    %c0_5 = arith.constant 0 : index
    %c0_6 = arith.constant 0 : index
    %c0_7 = arith.constant 0 : index
    %4 = vector.load %arg4[%c0_5, %c0_6, %c0_7] : memref<1x32x8xf32, #tpu.memory_space<vmem>>, vector<1x32x8xf32>
    %5 = vector.shape_cast %4 : vector<1x32x8xf32> to vector<32x8xf32>
    %cst = arith.constant dense<0.000000e+00> : vector<16x8xf32>
    %6 = tpu.matmul %1, %5, %cst {dimension_numbers = #tpu.dot_dimension_numbers<[1], [0], [0], [1], [0, 0, 1, 1], [], []>} : vector<16x32xf32>, vector<32x8xf32>, vector<16x8xf32> -> vector<16x8xf32>
    %7 = vector.shape_cast %6 : vector<16x8xf32> to vector<2x8x8xf32>
    %c0_8 = arith.constant 0 : index
    %c0_9 = arith.constant 0 : index
    %c0_10 = arith.constant 0 : index
    %8 = vector.load %arg5[%c0_8, %c0_9, %c0_10] : memref<1x32x8xf32, #tpu.memory_space<vmem>>, vector<1x32x8xf32>
    %9 = vector.shape_cast %8 : vector<1x32x8xf32> to vector<32x8xf32>
    %cst_11 = arith.constant dense<0.000000e+00> : vector<32x8xf32>
    %10 = tpu.matmul %3, %9, %cst_11 {dimension_numbers = #tpu.dot_dimension_numbers<[1], [0], [0], [1], [0, 0, 1, 1], [], []>} : vector<32x32xf32>, vector<32x8xf32>, vector<32x8xf32> -> vector<32x8xf32>
    %11 = vector.shape_cast %10 : vector<32x8xf32> to vector<2x16x8xf32>
    %c0_12 = arith.constant 0 : index
    %c0_13 = arith.constant 0 : index
    %c0_14 = arith.constant 0 : index
    %12 = vector.load %arg6[%c0_12, %c0_13, %c0_14] : memref<1x32x8xf32, #tpu.memory_space<vmem>>, vector<1x32x8xf32>
    %13 = vector.shape_cast %12 : vector<1x32x8xf32> to vector<32x8xf32>
    %cst_15 = arith.constant dense<0.000000e+00> : vector<32x8xf32>
    %14 = tpu.matmul %3, %13, %cst_15 {dimension_numbers = #tpu.dot_dimension_numbers<[1], [0], [0], [1], [0, 0, 1, 1], [], []>} : vector<32x32xf32>, vector<32x8xf32>, vector<32x8xf32> -> vector<32x8xf32>
    %15 = vector.shape_cast %14 : vector<32x8xf32> to vector<2x16x8xf32>
    "tpu.trace_start"() <{level = 10 : i32, message = "bqd,bkd->bqk"}> : () -> ()
    %cst_16 = arith.constant dense<0.000000e+00> : vector<2x8x16xf32>
    %16 = tpu.matmul %7, %11, %cst_16 {dimension_numbers = #tpu.dot_dimension_numbers<[2], [2], [1], [1], [0, 0, 0, 1, 1, 1], [0], [0]>} : vector<2x8x8xf32>, vector<2x16x8xf32>, vector<2x8x16xf32> -> vector<2x8x16xf32>
    "tpu.trace_stop"() : () -> ()
    %cst_17 = arith.constant 0.353553385 : f32
    %17 = vector.broadcast %cst_17 : f32 to vector<2x8x16xf32>
    %18 = arith.mulf %16, %17 : vector<2x8x16xf32>
    %cst_18 = arith.constant dense<0xFF800000> : vector<2x8xf32>
    %19 = vector.multi_reduction <maximumf>, %18, %cst_18 [2] : vector<2x8x16xf32> to vector<2x8xf32>
    %20 = vector.shape_cast %19 : vector<2x8xf32> to vector<2x8x1xf32>
    %21 = vector.broadcast %20 : vector<2x8x1xf32> to vector<2x8x16xf32>
    %22 = arith.subf %18, %21 : vector<2x8x16xf32>
    %23 = math.exp %22 : vector<2x8x16xf32>
    %cst_19 = arith.constant dense<0.000000e+00> : vector<2x8xf32>
    %24 = vector.multi_reduction <add>, %23, %cst_19 [2] : vector<2x8x16xf32> to vector<2x8xf32>
    %25 = vector.shape_cast %24 : vector<2x8xf32> to vector<2x8x1xf32>
    %26 = vector.broadcast %25 : vector<2x8x1xf32> to vector<2x8x16xf32>
    %27 = arith.divf %23, %26 : vector<2x8x16xf32>
    "tpu.trace_start"() <{level = 10 : i32, message = "bqk,bkd->bqd"}> : () -> ()
    %cst_20 = arith.constant dense<0.000000e+00> : vector<2x8x8xf32>
    %28 = tpu.matmul %27, %15, %cst_20 {dimension_numbers = #tpu.dot_dimension_numbers<[2], [1], [1], [2], [0, 0, 0, 1, 1, 2], [0], [0]>} : vector<2x8x16xf32>, vector<2x16x8xf32>, vector<2x8x8xf32> -> vector<2x8x8xf32>
    "tpu.trace_stop"() : () -> ()
    %29 = vector.shape_cast %28 : vector<2x8x8xf32> to vector<16x8xf32>
    %c0_21 = arith.constant 0 : index
    %c0_22 = arith.constant 0 : index
    %c0_23 = arith.constant 0 : index
    %30 = vector.load %arg7[%c0_21, %c0_22, %c0_23] : memref<1x8x32xf32, #tpu.memory_space<vmem>>, vector<1x8x32xf32>
    %31 = vector.shape_cast %30 : vector<1x8x32xf32> to vector<8x32xf32>
    %cst_24 = arith.constant dense<0.000000e+00> : vector<16x32xf32>
    %32 = tpu.matmul %29, %31, %cst_24 {dimension_numbers = #tpu.dot_dimension_numbers<[1], [0], [0], [1], [0, 0, 1, 1], [], []>} : vector<16x8xf32>, vector<8x32xf32>, vector<16x32xf32> -> vector<16x32xf32>
    %33 = vector.shape_cast %32 : vector<16x32xf32> to vector<2x8x32xf32>
    %c0_i32 = arith.constant 0 : i32
    %34 = arith.cmpi eq, %arg1, %c0_i32 : i32
    %35 = arith.extui %34 : i1 to i32
    %c0_i32_25 = arith.constant 0 : i32
    %36 = arith.cmpi ne, %35, %c0_i32_25 : i32
    scf.if %36 {
      %cst_33 = arith.constant 0.000000e+00 : f32
      %43 = vector.broadcast %cst_33 : f32 to vector<2x8x32xf32>
      %c0_34 = arith.constant 0 : index
      %c0_35 = arith.constant 0 : index
      %c0_36 = arith.constant 0 : index
      %44 = vector.load %arg9[%c0_34, %c0_35, %c0_36] : memref<2x8x32xf32, #tpu.memory_space<vmem>>, vector<2x8x32xf32>
      tpu.vector_store %arg9[%c0_34, %c0_35, %c0_36], %43 {strides = array<i32>} : memref<2x8x32xf32, #tpu.memory_space<vmem>>, vector<2x8x32xf32>,
    } else {
    }
    %c0_26 = arith.constant 0 : index
    %c0_27 = arith.constant 0 : index
    %c0_28 = arith.constant 0 : index
    %37 = vector.load %arg9[%c0_26, %c0_27, %c0_28] : memref<2x8x32xf32, #tpu.memory_space<vmem>>, vector<2x8x32xf32>
    %38 = arith.addf %37, %33 : vector<2x8x32xf32>
    %c0_29 = arith.constant 0 : index
    %c0_30 = arith.constant 0 : index
    %c0_31 = arith.constant 0 : index
    %39 = vector.load %arg9[%c0_29, %c0_30, %c0_31] : memref<2x8x32xf32, #tpu.memory_space<vmem>>, vector<2x8x32xf32>
    tpu.vector_store %arg9[%c0_29, %c0_30, %c0_31], %38 {strides = array<i32>} : memref<2x8x32xf32, #tpu.memory_space<vmem>>, vector<2x8x32xf32>,
    %c3_i32 = arith.constant 3 : i32
    %40 = arith.cmpi eq, %arg1, %c3_i32 : i32
    %41 = arith.extui %40 : i1 to i32
    %c0_i32_32 = arith.constant 0 : i32
    %42 = arith.cmpi ne, %41, %c0_i32_32 : i32
    scf.if %42 {
      %c0_33 = arith.constant 0 : index
      %c0_34 = arith.constant 0 : index
      %c0_35 = arith.constant 0 : index
      %43 = vector.load %arg9[%c0_33, %c0_34, %c0_35] : memref<2x8x32xf32, #tpu.memory_space<vmem>>, vector<2x8x32xf32>
      %c0_36 = arith.constant 0 : index
      %c0_37 = arith.constant 0 : index
      %44 = vector.load %arg8[%c0_36, %c0_37] : memref<1x32xf32, #tpu.memory_space<vmem>>, vector<1x32xf32>
      %45 = vector.shape_cast %44 : vector<1x32xf32> to vector<1x1x32xf32>
      %46 = vector.broadcast %45 : vector<1x1x32xf32> to vector<2x8x32xf32>
      %47 = arith.addf %43, %46 : vector<2x8x32xf32>
      %c0_38 = arith.constant 0 : index
      %c0_39 = arith.constant 0 : index
      %c0_40 = arith.constant 0 : index
      %48 = vector.load %arg9[%c0_38, %c0_39, %c0_40] : memref<2x8x32xf32, #tpu.memory_space<vmem>>, vector<2x8x32xf32>
      tpu.vector_store %arg9[%c0_38, %c0_39, %c0_40], %47 {strides = array<i32>} : memref<2x8x32xf32, #tpu.memory_space<vmem>>, vector<2x8x32xf32>,
    } else {
    }
    return
  }
  func.func @transform_0(%arg0: i32, %arg1: i32) -> (i32, i32, i32) {
    %c0_i32 = arith.constant 0 : i32
    %c0_i32_0 = arith.constant 0 : i32
    %c0_i32_1 = arith.constant 0 : i32
    return %arg0, %c0_i32, %c0_i32_0 : i32, i32, i32
  }
  func.func @transform_1(%arg0: i32, %arg1: i32) -> (i32, i32, i32) {
    %c0_i32 = arith.constant 0 : i32
    %c0_i32_0 = arith.constant 0 : i32
    %c0_i32_1 = arith.constant 0 : i32
    return %arg0, %c0_i32, %c0_i32_0 : i32, i32, i32
  }
  func.func @transform_2(%arg0: i32, %arg1: i32) -> (i32, i32, i32) {
    %c0_i32 = arith.constant 0 : i32
    %c0_i32_0 = arith.constant 0 : i32
    %c0_i32_1 = arith.constant 0 : i32
    return %arg1, %c0_i32, %c0_i32_0 : i32, i32, i32
  }
  func.func @transform_3(%arg0: i32, %arg1: i32) -> (i32, i32, i32) {
    %c0_i32 = arith.constant 0 : i32
    %c0_i32_0 = arith.constant 0 : i32
    %c0_i32_1 = arith.constant 0 : i32
    return %arg1, %c0_i32, %c0_i32_0 : i32, i32, i32
  }
  func.func @transform_4(%arg0: i32, %arg1: i32) -> (i32, i32, i32) {
    %c0_i32 = arith.constant 0 : i32
    %c0_i32_0 = arith.constant 0 : i32
    %c0_i32_1 = arith.constant 0 : i32
    return %arg1, %c0_i32, %c0_i32_0 : i32, i32, i32
  }
  func.func @transform_5(%arg0: i32, %arg1: i32) -> (i32, i32, i32) {
    %c0_i32 = arith.constant 0 : i32
    %c0_i32_0 = arith.constant 0 : i32
    %c0_i32_1 = arith.constant 0 : i32
    return %arg1, %c0_i32, %c0_i32_0 : i32, i32, i32
  }
  func.func @transform_6(%arg0: i32, %arg1: i32) -> (i32, i32) {
    %c0_i32 = arith.constant 0 : i32
    %c0_i32_0 = arith.constant 0 : i32
    %c0_i32_1 = arith.constant 0 : i32
    return %c0_i32, %c0_i32_0 : i32, i32
  }
  func.func @transform_7(%arg0: i32, %arg1: i32) -> (i32, i32, i32) {
    %c0_i32 = arith.constant 0 : i32
    %c0_i32_0 = arith.constant 0 : i32
    %c0_i32_1 = arith.constant 0 : i32
    return %arg0, %c0_i32, %c0_i32_0 : i32, i32, i32
  }
}

</mosaic_0001>

<bundles_post_ra>
// kernel: tpu_custom_call.1
= control target key start
LH: loop header
LB: loop body
LE: loop exit
PB: predicated region body
PF: predicated region fallthrough
CT: control target
= control target key end

     0   :  { %12 = vsyncpa [#allocation3], 0  ;;  %s1574_s24 = smov 0   ;;  %s1576_s25 = smov 0   ;;  %s1705_s0 = inlined_call_operand.vmem [shape: f32[2,8,32], index: 0, kind: input, shape index: {}]   ;;  %s1706_s1 = inlined_call_operand.vmem [shape: f32[2,16,32], index: 1, kind: input, shape index: {}]   ;;  %s1707_s2 = inlined_call_operand.vmem [shape: f32[4,32,8], index: 2, kind: input, shape index: {}]   ;;  %s1708_s3 = inlined_call_operand.vmem [shape: f32[4,32,8], index: 3, kind: input, shape index: {}]   ;;  %s1709_s4 = inlined_call_operand.vmem [shape: f32[4,32,8], index: 4, kind: input, shape index: {}]   ;;  %s1710_s5 = inlined_call_operand.vmem [shape: f32[4,8,32], index: 5, kind: input, shape index: {}]   ;;  %s1711_s6 = inlined_call_operand.vmem [shape: f32[1,32], index: 6, kind: input, shape index: {}]   ;;  %s1712_s7 = inlined_call_operand.hbm [shape: f32[2,8,32], index: 7, kind: output, shape index: {}]  }
   0x1   :  { %s1578_s26 = smov 0  }
   0x2 LB: > { %s1238_s27 = sadd.s32 4294967295, %s1525_s26   ;;  %s27_s28 = sadd.s32 1, %s1521_s25  ;;  %s1525_s26 = sphi %s1578_s26, %s18_s26   ;;  %s1521_s25 = sphi %s1576_s25, %s1715_s25   ;;  %s1517_s24 = sphi %s1574_s24, %s1714_s24  }
   0x3   : > { %p28_p0 = scmp.ge.s32.totalorder %s27_s28, 4  ;;  %p1243_p1 = scmp.ge.s32.totalorder %s1525_s26, 1 }
   0x4   : > { %p302_p2 = scmp.lt.s32.totalorder %s1525_s26, 5 }
   0x5   : > { %s1717_s28 = smov (%p28_p0, %s27_s28), 0 }
   0x6   : > { %p303_p3 = pnand %p1243_p1, %p302_p2 }
   0x7   : > { %p367_p4 = scmp.lt.s32.totalorder (!%p303_p3), %s1517_s24, 3  ;;  %v389_v0 = vld [vmem:[%s1706_s1] sm:$0xff] (!%p303_p3)  ;;  %vm397_vm0 = vcmask (!%p303_p3), 261120   ;;  %v390_v19 = vld [vmem:[%s1706_s1 + $0x8] sm:$0xff] (!%p303_p3)  ;;  %v391_v20 = vld [vmem:[%s1706_s1 + $0x10] sm:$0xff] (!%p303_p3)  ;;  %v1527_v24 = vmov (!%p303_p3), 0.0|0.0  }
   0x8   : > { %306 = sbr.rel (%p303_p3) target bundleno = 1249 (0x4e1), region = 48  ;;  %1337 = vmatprep.mubr.msk.f32.mxu1 (!%p303_p3), %vm397_vm0, %v389_v0  ;;  %v387_v1 = vld [vmem:[%s1705_s0] sm:$0xff] (!%p303_p3)  ;;  %v388_v21 = vld [vmem:[%s1705_s0 + $0x8] sm:$0xff] (!%p303_p3)  ;;  %v392_v23 = vld [vmem:[%s1706_s1 + $0x18] sm:$0xff] (!%p303_p3)  ;;  %vm1528_vm1 = vmmov (!%p303_p3), 0   ;;  %v1529_v25 = vmov (!%p303_p3), 0.0  }
   0x9   : > { %1326 = vmatprep.mubr.msk.f32.mxu0 (!%p303_p3), %vm397_vm0, %v387_v1  ;;  %vm669_vm2 = vcmask (!%p303_p3), 64512   ;;  %vm830_vm4 = vcmask (!%p303_p3), 130048   ;;  %p1271_p5 = scmp.ne.s32.totalorder (!%p303_p3), %s1517_s24, 0 }
   0xa   : > { %vm1416_vm3 = vmpackc.low (!%p303_p3), %vm669_vm2, %vm669_vm2 }
   0xf   : > { %s1604_s10 = scalar_select %p367_p4, %s1517_s24, 3 }
  0x11   : > { %s1278_s11 = sshll.u32 %s1604_s10, 5  ;;  %s1250_s12 = sshll.u32 %s1604_s10, 3 }
  0x12   : > { %s376_s14 = scalar_lea.vmem %s1708_s3, %s1278_s11  ;;  %s371_s17 = scalar_lea.vmem %s1707_s2, %s1278_s11 }
  0x13   : > { %v479_v2 = vld [vmem:[%s376_s14] sm:$0xff]  ;;  %v480_v3 = vld [vmem:[%s376_s14 + $0x8] sm:$0xff]  ;;  %v481_v4 = vld [vmem:[%s376_s14 + $0x10] sm:$0xff]  ;;  %s381_s20 = scalar_lea.vmem %s1709_s4, %s1278_s11  ;;  %s385_s15 = scalar_lea.vmem %s1710_s5, %s1250_s12 }
  0x14   : > { %v1398_v5 = vpack.c.bf16 %v480_v3, %v479_v2  ;;  %v482_v6 = vld [vmem:[%s376_s14 + $0x18] sm:$0xff]  ;;  %v393_v7 = vld [vmem:[%s371_s17] sm:$0xff]  ;;  %v394_v8 = vld [vmem:[%s371_s17 + $0x8] sm:$0xff] }
  0x15   : > { %v1402_v9 = vpack.c.bf16 %v482_v6, %v481_v4  ;;  %v1390_v10 = vpack.c.bf16 %v394_v8, %v393_v7  ;;  %v395_v11 = vld [vmem:[%s371_s17 + $0x10] sm:$0xff]  ;;  %v396_v12 = vld [vmem:[%s371_s17 + $0x18] sm:$0xff]  ;;  %v580_v14 = vld [vmem:[%s381_s20] sm:$0xff]  ;;  %v1530_v7 = vmov (!%p1271_p5), 0.0  }
  0x16   : > { %1399 = vmatprep.subr.bf16.mxu1 %v1398_v5  ;;  %v1394_v13 = vpack.c.bf16 %v396_v12, %v395_v11  ;;  %v581_v15 = vld [vmem:[%s381_s20 + $0x8] sm:$0xff]  ;;  %v582_v17 = vld [vmem:[%s381_s20 + $0x10] sm:$0xff]  ;;  %v583_v18 = vld [vmem:[%s381_s20 + $0x18] sm:$0xff]  ;;  %1085 = vst.msk [vmem:[#allocation2] sm:$0xff] (!%p1271_p5), %vm397_vm0, %v1530_v7 }
  0x17   : > { %1401 = vmatpush3.bf16.msra.mxu1 %v1398_v5  ;;  %1391 = vmatprep.subr.bf16.mxu0 %v1390_v10  ;;  %v1406_v16 = vpack.c.bf16 %v581_v15, %v580_v14  ;;  %v1410_v22 = vpack.c.bf16 %v583_v18, %v582_v17  ;;  %1086 = vst.msk [vmem:[#allocation2 + $0x8] sm:$0xff] (!%p1271_p5), %vm397_vm0, %v1530_v7 }
  0x18   : > { %1403 = vmatprep.subr.bf16.mxu1 %v1402_v9  ;;  %1393 = vmatpush3.bf16.msra.mxu0 %v1390_v10 }
  0x19   : > { %1395 = vmatprep.subr.bf16.mxu0 %v1394_v13 }
  0x1b   : > { %1405 = vmatpush3.bf16.msra.mxu1 %v1402_v9 }
  0x1c   : > { %1397 = vmatpush3.bf16.msra.mxu0 %v1394_v13  ;;  %1414 = vmatprep.subr.bf16.mxu1 %v1527_v24 }
  0x1d   : > { %1407 = vmatprep.subr.bf16.mxu0 %v1406_v16 }
  0x1e   : > { %1338 = vmatmul.mubr.msk.f32.vlgmr.msra.gmra.mrb[0].mxu1 %vm397_vm0, %v390_v19 }
  0x1f   : > { %1340 = vmatprep.mubr.msk.f32.mxu1 %vm397_vm0, %v391_v20  ;;  %1327 = vmatmul.mubr.msk.f32.vlgmr.msra.gmra.mrb[0].mxu0 %vm397_vm0, %v388_v21 }
  0x20   : > { %1409 = vmatpush3.bf16.msra.mxu0 %v1406_v16  ;;  %1351 = vmatprep.mubr.msk.f32.mxu0 %vm397_vm0, %v389_v0  ;;  %v999_v0 = vld [vmem:[%s385_s15] sm:$0xff] }
  0x21   : > { %1411 = vmatprep.subr.bf16.mxu0 %v1410_v22 }
  0x22   : > { %1341 = vmatmul.mubr.msk.f32.gmra.mrb[2].mxu1 %vm397_vm0, %v392_v23 }
  0x23   : > { %1361 = vmatprep.mubr.msk.f32.mxu1 %vm1528_vm1, %v1529_v25 }
  0x24   : > { %1413 = vmatpush3.bf16.msra.mxu0 %v1410_v22 }
  0x25   : > { %1418 = vmatprep.subr.bf16.mxu0 %v1527_v24 }
  0x27   : > { %1352 = vmatmul.mubr.msk.f32.vlgmr.msra.gmra.mrb[2].mxu0 %vm397_vm0, %v390_v19 }
  0x28   : > { %1354 = vmatprep.mubr.msk.f32.mxu0 %vm397_vm0, %v391_v20 }
  0x2b   : > { %1355 = vmatmul.mubr.msk.f32.gmra.mrb[4].mxu0 %vm397_vm0, %v392_v23 }
  0x2c   : > { %1368 = vmatprep.mubr.msk.f32.mxu0 %vm1528_vm1, %v1529_v25 }
  0xf1   : > { %v1339_v26 = vpop.f32.mrb[0].mxu1 }
  0xf2   : > { %v561_v27 = vpop.f32.mrb[1].mxu1  ;;  %v1328_v28 = vpop.f32.mrb[0].mxu0 }
  0xf3   : > { %v1415_v29 = vpack.c.bf16 %v1339_v26, %v561_v27  ;;  %v470_v30 = vpop.f32.mrb[1].mxu0 }
  0xf5   : > { %v1342_v31 = vpop.f32.mrb[2].mxu1  ;;  %1417 = vmatpush3.bf16.xpose.msk.msra.mxu1 %vm1416_vm3, %v1415_v29 }
  0xf6   : > { %v571_v32 = vpop.f32.mrb[3].mxu1  ;;  %1422 = vmatprep.subr.bf16.mxu1 %v1527_v24 }
  0xf7   : > { %v1419_v33 = vpack.c.bf16 %v1342_v31, %v571_v32 }
  0xf9   : > { %1421 = vmatpush3.bf16.xpose.msk.msra.mxu0 %vm1416_vm3, %v1419_v33 }
  0xfa   : > { %v1353_v34 = vpop.f32.mrb[2].mxu0  ;;  %1385 = vmatprep.subr.mxu0 %v999_v0 }
  0xfb   : > { %v650_v35 = vpop.f32.mrb[3].mxu0 }
  0xfc   : > { %1362 = vmatmul.mubr.msk.f32.vlgmr.msra.gmra.mrb[4].mxu1 %vm669_vm2, %v470_v30  ;;  %v1423_v36 = vpack.c.bf16 %v1353_v34, %v650_v35 }
  0xfd   : > { %1375 = vmatprep.mubr.msk.f32.mxu1 %vm1528_vm1, %v1529_v25 }
  0xfe   : > { %v1356_v37 = vpop.f32.mrb[4].mxu0  ;;  %1424 = vmatpush3.bf16.msra.mxu1 %v1423_v36 }
  0xff   : > { %1425 = vmatprep.subr.bf16.mxu1 %v1527_v24  ;;  %v660_v38 = vpop.f32.mrb[5].mxu0 }
 0x100   : > { %1369 = vmatmul.mubr.msk.f32.vlgmr.msra.gmra.mrb[6].mxu0 %vm669_vm2, %v1328_v28  ;;  %v1426_v39 = vpack.c.bf16 %v1356_v37, %v660_v38 }
 0x101   : > { %1386 = vmatpush3.msra.mxu0 %v999_v0 }
 0x1cf   : > { %v745_v40 = vpop.f32.mrb[4].mxu1 }
 0x1d0   : > { %v828_v41 = vmul.f32 0.35355338, %v745_v40  ;;  %v1363_v42 = vpop.f32.mrb[5].mxu1 }
 0x1d2   : > { %v831_v43 = vsel %vm830_vm4, %v828_v41, -inf }
 0x1d3   : > { %832 = vmax.xlane.f32.xlu0 %v831_v43  ;;  %v824_v44 = vpop.f32.mrb[6].mxu0 }
 0x1d4   : > { %v829_v45 = vmul.f32 0.35355338, %v824_v44  ;;  %v1370_v46 = vpop.f32.mrb[7].mxu0 }
 0x1d6   : > { %v834_v47 = vsel %vm830_vm4, %v829_v45, -inf }
 0x1d7   : > { %835 = vmax.xlane.f32.xlu0 %v834_v47 }
 0x260   : > { %v833_v48 = vpop.xlane.xlu0 %832 }
 0x261   : > { %v837_v49 = vsub.f32 %v828_v41, %v833_v48 }
 0x263   : > { %v839_v50 = vmul.f32 1.442695, %v837_v49 }
 0x264   : > { %v836_v51 = vpop.xlane.xlu0 %835 }
 0x265   : > { %1465 = vpow2.f32 %v839_v50  ;;  %v838_v52 = vsub.f32 %v829_v45, %v836_v51 }
 0x267   : > { %v841_v53 = vmul.f32 1.442695, %v838_v52 }
 0x269   : > { %1467 = vpow2.f32 %v841_v53 }
 0x26f   : > { %v1466_v54 = vpop.eup %1465 }
 0x270   : > { %v843_v55 = vsel %vm830_vm4, %v1466_v54, 0.0 }
 0x271   : > { %844 = vadd.xlane.f32.xlu1 %v843_v55 }
 0x273   : > { %v1468_v56 = vpop.eup %1467 }
 0x274   : > { %v846_v57 = vsel %vm830_vm4, %v1468_v56, 0.0 }
 0x275   : > { %847 = vadd.xlane.f32.xlu1 %v846_v57 }
 0x2fe   : > { %v845_v58 = vpop.xlane.xlu1 %844 }
 0x2ff   : > { %1469 = vrcp.f32 %v845_v58 }
 0x302   : > { %v848_v59 = vpop.xlane.xlu1 %847 }
 0x303   : > { %1471 = vrcp.f32 %v848_v59 }
 0x309   : > { %v1470_v60 = vpop.eup %1469 }
 0x30a   : > { %v850_v61 = vmul.f32 %v1470_v60, %v1466_v54 }
 0x30c   : > { %1376 = vmatmul.mubr.msk.f32.vlgmr.msra.gmra.mrb[6].mxu1 %vm830_vm4, %v850_v61 }
 0x30d   : > { %v1472_v62 = vpop.eup %1471  ;;  %1427 = vmatpush3.bf16.msra.mxu1 %v1426_v39  ;;  %1382 = vmatprep.mubr.msk.f32.mxu1 %vm1528_vm1, %v1529_v25 }
 0x30e   : > { %v852_v63 = vmul.f32 %v1472_v62, %v1468_v56 }
 0x310   : > { %1383 = vmatmul.mubr.msk.f32.vlgmr.msra.gmra.mrb[8].mxu1 %vm830_vm4, %v852_v63 }
 0x3df   : > { %v922_v1 = vpop.f32.mrb[6].mxu1 }
 0x3e0   : > { %v1377_v2 = vpop.f32.mrb[7].mxu1  ;;  %1387 = vmatprep.mubr.msk.f32.mxu0 %vm669_vm2, %v922_v1 }
 0x3e3   : > { %v995_v3 = vpop.f32.mrb[8].mxu1 }
 0x3e4   : > { %v1384_v4 = vpop.f32.mrb[9].mxu1  ;;  %1388 = vmatmul.mubr.msk.f32.vlgmr.msra.gmra.mrb[8].mxu0 %vm669_vm2, %v995_v3 }
 0x4b2   : > { %1084 = sbr.rel (%p1271_p5) target bundleno = 1209 (0x4b9), region = 52 }
 0x4b7   : > { %v1389_v5 = vpop.f32.mrb[8].mxu0 }
 0x4b8   : > { %v1072_v6 = vpop.f32.mrb[9].mxu0 }
 0x4b9 PF: > { %v1087_v8 = vld [vmem:[#allocation2] sm:$0xff]  ;;  %v1088_v9 = vld [vmem:[#allocation2 + $0x8] sm:$0xff]  ;;  %p1272_p6 = scmp.ne.s32.totalorder %s1517_s24, 3 }
 0x4ba   : > { %v1089_v10 = vadd.f32 %v1087_v8, %v1072_v6  ;;  %v1090_v11 = vadd.f32 %v1389_v5, %v1088_v9  ;;  %v1273_v13 = vld [vmem:[%s1711_s6] ss:$0 sm:$0xff] (!%p1272_p6) }
 0x4bb   : > { %1096 = sbr.rel (%p1272_p6) target bundleno = 1223 (0x4c7), region = 56 }
 0x4bc   : > { %1091 = vst.msk [vmem:[#allocation2] sm:$0xff] %vm397_vm0, %v1089_v10  ;;  %1092 = vst.msk [vmem:[#allocation2 + $0x8] sm:$0xff] %vm397_vm0, %v1090_v11 }
 0x4c3   : > { %v1097_v12 = vld [vmem:[#allocation2] sm:$0xff]  ;;  %v1098_v14 = vld [vmem:[#allocation2 + $0x8] sm:$0xff] }
 0x4c4   : > { %v1106_v15 = vadd.f32 %v1273_v13, %v1097_v12  ;;  %v1107_v16 = vadd.f32 %v1273_v13, %v1098_v14 }
 0x4c6   : > { %1108 = vst.msk [vmem:[#allocation2] sm:$0xff] %vm397_vm0, %v1106_v15  ;;  %1109 = vst.msk [vmem:[#allocation2 + $0x8] sm:$0xff] %vm397_vm0, %v1107_v16 }
 0x4c7 PF: > { %p1670_p7 = scmp.eq.s32.totalorder %s1238_s27, 3  ;;  %s1531_s24 = smov [#allocation2]  }
 0x4c8   : > { %s1119_s18 = sshll.u32 %s1531_s24, 4  ;;  %s1120_s18 = int_to_ptr.vmem [resolvable:$true] %s1119_s18 }
 0x4c9   : > { %s1473_s19 = scalar_lea.vmem %s1120_s18, 256  ;;  %p1480_p11 = scmp.lt.s32.totalorder %s1120_s18, %s1120_s18 }
 0x4ca   : > { %p1474_p8 = scmp.ne.s32.totalorder %s1120_s18, %s1473_s19  ;;  %p1481_p12 = scmp.lt.s32.totalorder %s1473_s19, %s1473_s19 }
 0x4cc   : > { %p1475_p9 = pnand %p1474_p8, %p1670_p7  ;;  %p1482_p13 = por %p1481_p12, %p1480_p11 }
 0x4ce   : > { %p1476_p10 = pneg %p1475_p9 }
 0x4d0   : > { %p1483_p0 = pnand %p1482_p13, %p1476_p10 }
 0x4d2   : > { %1486 = shalt.err (!%p1483_p0)
}
 0x4d3   : > { %s1487_s27 = scalar_lea.hbm %s1712_s7, 256 }
 0x4d4   : > { %p1488_p1 = scmp.ne.s32.totalorder %s1712_s7, %s1487_s27  ;;  %p1493_p4 = scmp.lt.u32.totalorder %s1487_s27, %s1712_s7 }
 0x4d6   : > { %p1489_p2 = pnand %p1488_p1, %p1670_p7 }
 0x4d8   : > { %p1490_p3 = pneg %p1489_p2 }
 0x4da   : > { %p1495_p5 = pnand %p1493_p4, %p1490_p3 }
 0x4dc   : > { %1498 = shalt.err (!%p1495_p5)
}
 0x4dd   : > { %s1532_s8 = smov 128   ;;  %s1533_s9 = smov 8  }
 0x4de   : > { %1429 = dma.vmem_to_hbm [thread:$0]  (%p1670_p7), %s1120_s18, 256, %s1712_s7, [#allocation3], %s1532_s8, %s1532_s8, %s1533_s9  }
 0x4df   : > { %1512 = dma.done.wait (%p1670_p7), [#allocation3], 256  }
 0x4e0   : > { %1514 = vsyncadd (%p1670_p7), [#allocation3], 4294967040 }
 0x4e1 PF: > { %s18_s26 = sadd.s32 1, %s1525_s26   ;;  %s1714_s24 = smov %s1521_s25 }
 0x4e2   : > { %p15_p6 = scmp.ge.s32.totalorder %s18_s26, 6   ;;  %s1715_s25 = smov %s1717_s28 }
 0x4e4   :  { %17 = sbr.rel (!%p15_p6) target bundleno = 2 (0x2), region = 99 }
 0x4eb   :  { %1135 = vsyncpa [#allocation3], 1 }
 0x4ec   :  { %1137 = vsyncpa [#allocation3 + $0x1], 1 }

</bundles_post_ra>
